<compile_context>
chip_gen: v7x
topology: tpu7x:2x2x1
jax: 0.10.0
libtpu: 0.0.40
codegen_flags: <defaults>
</compile_context>

<pallas_src>
import jax
import jax.numpy as jnp
from jax import lax
from jax.experimental import pallas as pl
from jax.experimental.pallas import tpu as pltpu


def fused_forward_kernel(ids_ref,               # VMEM [2B, S] int32
                         embed_ref,             # VMEM [Vp, Hp] f32 (resident)
                         w_ref,                 # VMEM [Hp, Hp] f32 (resident)
                         b_ref,                 # VMEM [1, Hp]  f32 (resident)
                         pooled_ref,            # out: VMEM [2B, Hp] f32
                         loss_ref):             # out: SMEM [1, 1]  f32
    two_b, seq = ids_ref.shape
    bsz = two_b // 2
    vpad = embed_ref.shape[0]
    inv_seq = 1.0 / seq                         # constant reciprocal, no divide

    # ---- vectorized embedding gather + mean-pool: counts @ embed on the MXU ----
    # counts[g, v] = #{s : ids[g, s] == v}; OOB ids simply never match (safe).
    ids = ids_ref[...]                                                  # [2B, S]
    vocab_iota = lax.broadcasted_iota(jnp.int32, (two_b, seq, vpad), 2)
    onehot = (ids[:, :, None] == vocab_iota).astype(jnp.float32)       # [2B, S, Vp]
    counts = jnp.sum(onehot, axis=1)                                    # [2B, Vp]
    pooled_pre = jnp.dot(counts, embed_ref[...],
                         preferred_element_type=jnp.float32) * inv_seq  # [2B, Hp]

    # ---- dense pooler: tanh(pooled @ W + b), one [2B,Hp]@[Hp,Hp] matmul ----
    h = jnp.dot(pooled_pre, w_ref[...], preferred_element_type=jnp.float32)
    out = jnp.tanh(h + b_ref[...])                                      # [2B, Hp]
    pooled_ref[...] = out

    # ---- scores = nl @ code^T (RHS-contraction, no transpose) + CE loss ----
    code = out[:bsz]                                                    # [B, Hp]
    nl = out[bsz:]                                                      # [B, Hp]
    scores = lax.dot_general(nl, code, (((1,), (1,)), ((), ())),
                             preferred_element_type=jnp.float32)        # [B, B]

    # CrossEntropy(scores, arange(B)) = mean_i( logsumexp(scores[i]) - scores[i,i] )
    m = jnp.max(scores, axis=-1, keepdims=True)                         # [B, 1]
    sum_exp = jnp.sum(jnp.exp(scores - m), axis=-1, keepdims=True)
    lse = m + jnp.log(sum_exp)                                          # [B, 1]
    row_i = lax.broadcasted_iota(jnp.int32, (bsz, bsz), 0)
    col_i = lax.broadcasted_iota(jnp.int32, (bsz, bsz), 1)
    diag = jnp.sum(jnp.where(row_i == col_i, scores, 0.0),
                   axis=-1, keepdims=True)                              # [B, 1]
    loss_ref[0, 0] = jnp.sum(lse - diag) * (1.0 / bsz)                  # scalar -> SMEM


def _round_up(x, m):
    return ((x + m - 1) // m) * m


def model_forward(params, code_inputs, nl_inputs, return_vec=False):
    bs, _seq = code_inputs.shape
    vocab, hidden = params["embed"].shape
    two_b = 2 * bs

    # Lane-dense zero-padding of hidden / vocab to multiples of 128 (exact:
    # padded regions are zero and contribute nothing to any output).
    hp = _round_up(hidden, 128)
    vp = _round_up(vocab, 128)
    embed_p = jnp.pad(params["embed"].astype(jnp.float32),
                      ((0, vp - vocab), (0, hp - hidden)))
    w_p = jnp.pad(params["w_pool"].astype(jnp.float32),
                  ((0, hp - hidden), (0, hp - hidden)))
    b_p = jnp.pad(params["b_pool"].astype(jnp.float32),
                  ((0, 0), (0, hp - hidden)))

    # inputs = cat(code, nl): rows [:bs] = code half, rows [bs:] = nl half.
    inputs = jnp.concatenate([code_inputs, nl_inputs], axis=0).astype(jnp.int32)

    pooled, loss = pl.pallas_call(
        fused_forward_kernel,
        grid=(1,),                                       # single fused invocation
        in_specs=[
            pl.BlockSpec((two_b, _seq), lambda i: (0, 0)),   # token ids (VMEM)
            pl.BlockSpec((vp, hp), lambda i: (0, 0)),        # embed table (resident)
            pl.BlockSpec((hp, hp), lambda i: (0, 0)),        # pooler W (resident)
            pl.BlockSpec((1, hp), lambda i: (0, 0)),         # pooler b (resident)
        ],
        out_specs=(
            pl.BlockSpec((two_b, hp), lambda i: (0, 0)),     # pooled vectors (lane-dense)
            pl.BlockSpec(memory_space=pltpu.MemorySpace.SMEM),  # scalar loss
        ),
        out_shape=(
            jax.ShapeDtypeStruct((two_b, hp), jnp.float32),
            jax.ShapeDtypeStruct((1, 1), jnp.float32),
        ),
        compiler_params=pltpu.CompilerParams(
            dimension_semantics=("arbitrary",),
            vmem_limit_bytes=64 * 1024 * 1024,
        ),
    )(inputs, embed_p, w_p, b_p)

    code_vec = pooled[:bs, :hidden]
    nl_vec = pooled[bs:, :hidden]
    if return_vec:
        return code_vec, nl_vec
    return loss[0, 0], code_vec, nl_vec


def reference_forward(params, code_inputs, nl_inputs):
    """Pure-JAX f32 reference of the same synthetic forward."""
    bs = code_inputs.shape[0]
    inputs = jnp.concatenate([code_inputs, nl_inputs], axis=0)
    emb = jnp.take(params["embed"], inputs, axis=0)               # [2B, S, H]
    pooled = jnp.mean(emb, axis=1)                                # [2B, H]
    out = jnp.tanh(pooled @ params["w_pool"] + params["b_pool"])  # [2B, H]
    code_vec, nl_vec = out[:bs], out[bs:]
    scores = nl_vec @ code_vec.T
    logp = jax.nn.log_softmax(scores, axis=-1)
    loss = -jnp.mean(logp[jnp.arange(bs), jnp.arange(bs)])
    return loss, code_vec, nl_vec


if __name__ == "__main__":
    bs, seq, hidden, vocab = 2, 8, 32, 64

    key = jax.random.PRNGKey(0)
    k_emb, k_w, k_b, k_code, k_nl = jax.random.split(key, 5)

    params = {
        "embed": jax.random.normal(k_emb, (vocab, hidden), dtype=jnp.float32) * 0.1,
        "w_pool": jax.random.normal(k_w, (hidden, hidden), dtype=jnp.float32) * 0.1,
        "b_pool": jax.random.normal(k_b, (1, hidden), dtype=jnp.float32) * 0.1,
    }
    code_inputs = jax.random.randint(k_code, (bs, seq), 0, vocab, dtype=jnp.int32)
    nl_inputs = jax.random.randint(k_nl, (bs, seq), 0, vocab, dtype=jnp.int32)

    loss, code_vec, nl_vec = model_forward(params, code_inputs, nl_inputs)
    jax.block_until_ready((loss, code_vec, nl_vec))

    assert loss.shape == ()
    assert code_vec.shape == (bs, hidden)
    assert nl_vec.shape == (bs, hidden)
    assert bool(jnp.isfinite(loss))

    ref_loss, ref_code, ref_nl = reference_forward(params, code_inputs, nl_inputs)
    assert jnp.allclose(code_vec, ref_code, rtol=5e-2, atol=5e-3)
    assert jnp.allclose(nl_vec, ref_nl, rtol=5e-2, atol=5e-3)
    assert jnp.allclose(loss, ref_loss, rtol=5e-2, atol=5e-3)

    # return_vec=True path (PyTorch module's other branch).
    cv, nv = model_forward(params, code_inputs, nl_inputs, return_vec=True)
    jax.block_until_ready((cv, nv))
    assert jnp.allclose(cv, ref_code, rtol=5e-2, atol=5e-3)
    assert jnp.allclose(nv, ref_nl, rtol=5e-2, atol=5e-3)

    print("KERNEL_OK")
</pallas_src>

<mosaic_0001>
module attributes {stable_mosaic.version = 11 : i64} {
  func.func @fused_forward_kernel(%arg0: i32, %arg1: memref<4x8xi32, #tpu.memory_space<vmem>>, %arg2: memref<128x128xf32, #tpu.memory_space<vmem>>, %arg3: memref<128x128xf32, #tpu.memory_space<vmem>>, %arg4: memref<1x128xf32, #tpu.memory_space<vmem>>, %arg5: memref<4x128xf32, #tpu.memory_space<vmem>>, %arg6: memref<1x1xf32, #tpu.memory_space<smem>>) attributes {dimension_semantics = [#tpu.dimension_semantics<arbitrary>], iteration_bounds = array<i64: 1>, scalar_prefetch = 0 : i64, scratch_operands = 0 : i64, tpu.core_type = #tpu.core_type<tc>, window_params = [{pipeline_mode = #tpu.pipeline_mode<synchronous>, transform_indices = @transform_0, window_bounds = array<i64: 4, 8>}, {pipeline_mode = #tpu.pipeline_mode<synchronous>, transform_indices = @transform_1, window_bounds = array<i64: 128, 128>}, {pipeline_mode = #tpu.pipeline_mode<synchronous>, transform_indices = @transform_2, window_bounds = array<i64: 128, 128>}, {pipeline_mode = #tpu.pipeline_mode<synchronous>, transform_indices = @transform_3, window_bounds = array<i64: 1, 128>}, {pipeline_mode = #tpu.pipeline_mode<synchronous>, transform_indices = @transform_4, window_bounds = array<i64: 4, 128>}, {transform_indices = @transform_5, window_bounds = array<i64: 1, 1>}]} {
    %c0 = arith.constant 0 : index
    %c0_0 = arith.constant 0 : index
    %0 = vector.load %arg1[%c0, %c0_0] : memref<4x8xi32, #tpu.memory_space<vmem>>, vector<4x8xi32>
    %1 = tpu.iota {dimensions = array<i32: 2>} : vector<4x8x128xi32>
    %2 = vector.shape_cast %0 : vector<4x8xi32> to vector<4x8x1xi32>
    %3 = vector.broadcast %2 : vector<4x8x1xi32> to vector<4x8x128xi32>
    %4 = arith.cmpi eq, %3, %1 : vector<4x8x128xi32>
    %5 = arith.extui %4 : vector<4x8x128xi1> to vector<4x8x128xi32>
    %6 = arith.sitofp %5 : vector<4x8x128xi32> to vector<4x8x128xf32>
    %cst = arith.constant dense<0.000000e+00> : vector<4x128xf32>
    %7 = vector.multi_reduction <add>, %6, %cst [1] : vector<4x8x128xf32> to vector<4x128xf32>
    %c0_1 = arith.constant 0 : index
    %c0_2 = arith.constant 0 : index
    %8 = vector.load %arg2[%c0_1, %c0_2] : memref<128x128xf32, #tpu.memory_space<vmem>>, vector<128x128xf32>
    %cst_3 = arith.constant dense<0.000000e+00> : vector<4x128xf32>
    %9 = tpu.matmul %7, %8, %cst_3 {dimension_numbers = #tpu.dot_dimension_numbers<[1], [0], [0], [1], [0, 0, 1, 1], [], []>} : vector<4x128xf32>, vector<128x128xf32>, vector<4x128xf32> -> vector<4x128xf32>
    %cst_4 = arith.constant 1.250000e-01 : f32
    %10 = vector.broadcast %cst_4 : f32 to vector<4x128xf32>
    %11 = arith.mulf %9, %10 : vector<4x128xf32>
    %c0_5 = arith.constant 0 : index
    %c0_6 = arith.constant 0 : index
    %12 = vector.load %arg3[%c0_5, %c0_6] : memref<128x128xf32, #tpu.memory_space<vmem>>, vector<128x128xf32>
    %cst_7 = arith.constant dense<0.000000e+00> : vector<4x128xf32>
    %13 = tpu.matmul %11, %12, %cst_7 {dimension_numbers = #tpu.dot_dimension_numbers<[1], [0], [0], [1], [0, 0, 1, 1], [], []>} : vector<4x128xf32>, vector<128x128xf32>, vector<4x128xf32> -> vector<4x128xf32>
    %c0_8 = arith.constant 0 : index
    %c0_9 = arith.constant 0 : index
    %14 = vector.load %arg4[%c0_8, %c0_9] : memref<1x128xf32, #tpu.memory_space<vmem>>, vector<1x128xf32>
    %15 = vector.broadcast %14 : vector<1x128xf32> to vector<4x128xf32>
    %16 = arith.addf %13, %15 : vector<4x128xf32>
    %17 = math.tanh %16 : vector<4x128xf32>
    %c0_10 = arith.constant 0 : index
    %c0_11 = arith.constant 0 : index
    %18 = vector.load %arg5[%c0_10, %c0_11] : memref<4x128xf32, #tpu.memory_space<vmem>>, vector<4x128xf32>
    tpu.vector_store %arg5[%c0_10, %c0_11], %17 {strides = array<i32>} : memref<4x128xf32, #tpu.memory_space<vmem>>, vector<4x128xf32>,
    %19 = vector.extract_strided_slice %17 {offsets = [0, 0], sizes = [2, 128], strides = [1, 1]} : vector<4x128xf32> to vector<2x128xf32>
    %20 = vector.extract_strided_slice %17 {offsets = [2, 0], sizes = [2, 128], strides = [1, 1]} : vector<4x128xf32> to vector<2x128xf32>
    %cst_12 = arith.constant dense<0.000000e+00> : vector<2x2xf32>
    %21 = tpu.matmul %20, %19, %cst_12 {dimension_numbers = #tpu.dot_dimension_numbers<[1], [1], [0], [0], [0, 0, 1, 0], [], []>} : vector<2x128xf32>, vector<2x128xf32>, vector<2x2xf32> -> vector<2x2xf32>
    %cst_13 = arith.constant dense<0xFF800000> : vector<2xf32>
    %22 = vector.multi_reduction <maximumf>, %21, %cst_13 [1] : vector<2x2xf32> to vector<2xf32>
    %23 = vector.shape_cast %22 : vector<2xf32> to vector<2x1xf32>
    %24 = vector.broadcast %23 : vector<2x1xf32> to vector<2x2xf32>
    %25 = arith.subf %21, %24 : vector<2x2xf32>
    %26 = math.exp %25 : vector<2x2xf32>
    %cst_14 = arith.constant dense<0.000000e+00> : vector<2xf32>
    %27 = vector.multi_reduction <add>, %26, %cst_14 [1] : vector<2x2xf32> to vector<2xf32>
    %28 = vector.shape_cast %27 : vector<2xf32> to vector<2x1xf32>
    %29 = math.log %28 : vector<2x1xf32>
    %30 = arith.addf %23, %29 : vector<2x1xf32>
    %31 = tpu.iota {dimensions = array<i32: 0>} : vector<2x2xi32>
    %32 = tpu.iota {dimensions = array<i32: 1>} : vector<2x2xi32>
    %33 = arith.cmpi eq, %31, %32 : vector<2x2xi32>
    %cst_15 = arith.constant 0.000000e+00 : f32
    %34 = vector.broadcast %cst_15 : f32 to vector<2x2xf32>
    %35 = arith.select %33, %21, %34 : vector<2x2xi1>, vector<2x2xf32>
    %cst_16 = arith.constant dense<0.000000e+00> : vector<2xf32>
    %36 = vector.multi_reduction <add>, %35, %cst_16 [1] : vector<2x2xf32> to vector<2xf32>
    %37 = vector.shape_cast %36 : vector<2xf32> to vector<2x1xf32>
    %38 = arith.subf %30, %37 : vector<2x1xf32>
    %39 = vector.shape_cast %38 : vector<2x1xf32> to vector<1x2x1xf32>
    %cst_17 = arith.constant dense<0.000000e+00> : vector<1xf32>
    %40 = vector.multi_reduction <add>, %39, %cst_17 [1, 2] : vector<1x2x1xf32> to vector<1xf32>
    %41 = vector.shape_cast %40 : vector<1xf32> to vector<1x1x1xf32>
    %42 = vector.extract %41[0, 0, 0] : f32 from vector<1x1x1xf32>
    %cst_18 = arith.constant 5.000000e-01 : f32
    %43 = arith.mulf %42, %cst_18 : f32
    %c0_19 = arith.constant 0 : index
    %c0_20 = arith.constant 0 : index
    %44 = memref.load %arg6[%c0_19, %c0_20] : memref<1x1xf32, #tpu.memory_space<smem>>
    memref.store %43, %arg6[%c0_19, %c0_20] : memref<1x1xf32, #tpu.memory_space<smem>>
    return
  }
  func.func @transform_0(%arg0: i32) -> (i32, i32) {
    %c0_i32 = arith.constant 0 : i32
    %c0_i32_0 = arith.constant 0 : i32
    %c0_i32_1 = arith.constant 0 : i32
    return %c0_i32, %c0_i32_0 : i32, i32
  }
  func.func @transform_1(%arg0: i32) -> (i32, i32) {
    %c0_i32 = arith.constant 0 : i32
    %c0_i32_0 = arith.constant 0 : i32
    %c0_i32_1 = arith.constant 0 : i32
    return %c0_i32, %c0_i32_0 : i32, i32
  }
  func.func @transform_2(%arg0: i32) -> (i32, i32) {
    %c0_i32 = arith.constant 0 : i32
    %c0_i32_0 = arith.constant 0 : i32
    %c0_i32_1 = arith.constant 0 : i32
    return %c0_i32, %c0_i32_0 : i32, i32
  }
  func.func @transform_3(%arg0: i32) -> (i32, i32) {
    %c0_i32 = arith.constant 0 : i32
    %c0_i32_0 = arith.constant 0 : i32
    %c0_i32_1 = arith.constant 0 : i32
    return %c0_i32, %c0_i32_0 : i32, i32
  }
  func.func @transform_4(%arg0: i32) -> (i32, i32) {
    %c0_i32 = arith.constant 0 : i32
    %c0_i32_0 = arith.constant 0 : i32
    %c0_i32_1 = arith.constant 0 : i32
    return %c0_i32, %c0_i32_0 : i32, i32
  }
  func.func @transform_5(%arg0: i32) -> (i32, i32) {
    %c0_i32 = arith.constant 0 : i32
    %c0_i32_0 = arith.constant 0 : i32
    %c0_i32_1 = arith.constant 0 : i32
    return %c0_i32, %c0_i32_0 : i32, i32
  }
}

</mosaic_0001>

<bundles_post_ra>
// kernel: tpu_custom_call.1
= control target key start
LH: loop header
LB: loop body
LE: loop exit
PB: predicated region body
PF: predicated region fallthrough
CT: control target
= control target key end

     0   :  { %11 = vsyncpa [#allocation3], 0  ;;  %s945_s0 = inlined_call_operand.hbm [shape: s32[4,8], index: 0, kind: input, shape index: {}]   ;;  %s946_s1 = inlined_call_operand.hbm [shape: f32[128,128], index: 1, kind: input, shape index: {}]   ;;  %s947_s2 = inlined_call_operand.hbm [shape: f32[128,128], index: 2, kind: input, shape index: {}]   ;;  %s948_s3 = inlined_call_operand.hbm [shape: f32[1,128], index: 3, kind: input, shape index: {}]   ;;  %s949_s4 = inlined_call_operand.hbm [shape: f32[4,128], index: 4, kind: output, shape index: {0}]   ;;  %s950_s5 = inlined_call_operand.hbm [shape: f32[1,1], index: 5, kind: output, shape index: {1}]  }
   0x1   :  { %12 = vsyncpa [#allocation7], 0 }
   0x2   :  { %13 = vsyncpa [#allocation10], 0 }
   0x3   :  { %14 = vsyncpa [#allocation4], 0 }
   0x4   :  { %15 = vsyncpa [#allocation5], 0  ;;  %s783_s18 = smov [#allocation6]   ;;  %s653_s22 = scalar_lea.hbm %s946_s1, 2048 }
   0x5   :  { %s31_s19 = sshll.u32 %s783_s18, 4  ;;  %p654_p0 = scmp.ne.s32.totalorder %s946_s1, %s653_s22  ;;  %s32_s19 = int_to_ptr.vmem [resolvable:$true] %s31_s19 }
   0x6   :  { %p657_p1 = scmp.lt.u32.totalorder %s653_s22, %s946_s1 }
   0x8   :  { %p659_p2 = pnand %p657_p1, %p654_p0 }
   0xa   :  { %662 = shalt.err (!%p659_p2)
}
   0xb   :  { %s663_s27 = scalar_lea.vmem %s32_s19, 2048  ;;  %p668_p4 = scmp.lt.s32.totalorder %s32_s19, %s32_s19 }
   0xc   :  { %p664_p3 = scmp.ne.s32.totalorder %s32_s19, %s663_s27  ;;  %p669_p5 = scmp.lt.s32.totalorder %s663_s27, %s663_s27 }
   0xe   :  { %p670_p6 = por %p669_p5, %p668_p4 }
  0x10   :  { %p671_p7 = pnand %p670_p6, %p664_p3 }
  0x12   :  { %674 = shalt.err (!%p671_p7)
}
  0x13   :  { %s784_s28 = smov 128   ;;  %s785_s29 = smov 8  }
  0x14   :  { %37 = dma.hbm_to_vmem [thread:$0]  %s946_s1, 2048, %s32_s19, [#allocation7], %s784_s28, %s784_s28, %s785_s29  }
  0x15   :  { %s786_s7 = smov [#allocation2]   ;;  %s787_s9 = smov [#allocation8]  }
  0x16   :  { %s22_s8 = sshll.u32 %s786_s7, 4  ;;  %s43_s10 = sshll.u32 %s787_s9, 4  ;;  %s23_s8 = int_to_ptr.vmem [resolvable:$true] %s22_s8  ;;  %s44_s10 = int_to_ptr.vmem [resolvable:$true] %s43_s10 }
  0x17   :  { %s675_s13 = scalar_lea.hbm %s945_s0, 64 }
  0x18   :  { %p676_p8 = scmp.ne.s32.totalorder %s945_s0, %s675_s13  ;;  %p679_p9 = scmp.lt.u32.totalorder %s675_s13, %s945_s0 }
  0x1a   :  { %p681_p10 = pnand %p679_p9, %p676_p8 }
  0x1c   :  { %684 = shalt.err (!%p681_p10)
}
  0x1d   :  { %s685_s1 = scalar_lea.vmem %s23_s8, 64  ;;  %p690_p12 = scmp.lt.s32.totalorder %s23_s8, %s23_s8 }
  0x1e   :  { %p686_p11 = scmp.ne.s32.totalorder %s23_s8, %s685_s1  ;;  %p691_p13 = scmp.lt.s32.totalorder %s685_s1, %s685_s1 }
  0x20   :  { %p692_p0 = por %p691_p13, %p690_p12 }
  0x22   :  { %p693_p1 = pnand %p692_p0, %p686_p11 }
  0x24   :  { %696 = shalt.err (!%p693_p1)
}
  0x25   :  { %25 = dma.hbm_to_vmem [thread:$0]  %s945_s0, 64, %s23_s8, [#allocation3]  }
  0x26   :  { %s697_s22 = scalar_lea.hbm %s947_s2, 2048 }
  0x27   :  { %p698_p2 = scmp.ne.s32.totalorder %s947_s2, %s697_s22  ;;  %p701_p3 = scmp.lt.u32.totalorder %s697_s22, %s947_s2 }
  0x29   :  { %p703_p4 = pnand %p701_p3, %p698_p2 }
  0x2b   :  { %706 = shalt.err (!%p703_p4)
}
  0x2c   :  { %s707_s27 = scalar_lea.vmem %s44_s10, 2048  ;;  %p712_p6 = scmp.lt.s32.totalorder %s44_s10, %s44_s10 }
  0x2d   :  { %p708_p5 = scmp.ne.s32.totalorder %s44_s10, %s707_s27  ;;  %p713_p7 = scmp.lt.s32.totalorder %s707_s27, %s707_s27 }
  0x2f   :  { %p714_p8 = por %p713_p7, %p712_p6 }
  0x31   :  { %p715_p9 = pnand %p714_p8, %p708_p5 }
  0x33   :  { %718 = shalt.err (!%p715_p9)
}
  0x34   :  { %49 = dma.hbm_to_vmem [thread:$0]  %s947_s2, 2048, %s44_s10, [#allocation7], %s784_s28, %s784_s28, %s785_s29  }
  0x35   :  { %s788_s6 = smov [#allocation9]   ;;  %s719_s11 = scalar_lea.hbm %s948_s3, 16 }
  0x36   :  { %s56_s7 = sshll.u32 %s788_s6, 4  ;;  %p720_p10 = scmp.ne.s32.totalorder %s948_s3, %s719_s11  ;;  %s57_s7 = int_to_ptr.vmem [resolvable:$true] %s56_s7 }
  0x37   :  { %p723_p11 = scmp.lt.u32.totalorder %s719_s11, %s948_s3 }
  0x39   :  { %p725_p12 = pnand %p723_p11, %p720_p10 }
  0x3b   :  { %728 = shalt.err (!%p725_p12)
}
  0x3c   :  { %s729_s16 = scalar_lea.vmem %s57_s7, 16  ;;  %s733_s2 = scalar_lea.vmem %s57_s7, 32 }
  0x3d   :  { %p730_p13 = scmp.ne.s32.totalorder %s57_s7, %s729_s16  ;;  %p734_p0 = scmp.lt.s32.totalorder %s57_s7, %s57_s7 }
  0x3e   :  { %p735_p1 = scmp.lt.s32.totalorder %s733_s2, %s729_s16 }
  0x40   :  { %p736_p2 = por %p735_p1, %p734_p0 }
  0x42   :  { %p737_p3 = pnand %p736_p2, %p730_p13 }
  0x44   :  { %740 = shalt.err (!%p737_p3)
}
  0x45   :  { %59 = dma.hbm_to_vmem [thread:$0]  %s948_s3, 16, %s57_s7, [#allocation10]  }
  0x46   :  { %773 = dma.done.wait [#allocation3], 64  }
  0x47   :  { %774 = vsyncadd [#allocation3], 4294967232 }
  0x48   :  { %775 = dma.done.wait [#allocation7], 4096  }
  0x49   :  { %776 = vsyncadd [#allocation7], 4294963200 }
  0x4a   :  { %777 = dma.done.wait [#allocation10], 16  }
  0x4b   :  { %778 = vsyncadd [#allocation10], 4294967280  ;;  %v73_v0 = vlaneseq  ;;  %v789_v1 = vmov 0.0|0.0   ;;  %v72_v7 = vld [vmem:[#allocation2] sm:$0xf]  ;;  %v139_v8 = vld [vmem:[#allocation6] sm:$0xff] }
  0x4c   :  { %586 = vmatprep.subr.bf16.mxu0 %v789_v1  ;;  %610 = vmatprep.subr.bf16.mxu1 %v789_v1  ;;  %v140_v9 = vld [vmem:[#allocation6 + $0x8] sm:$0xff]  ;;  %v141_v12 = vld [vmem:[#allocation6 + $0x10] sm:$0xff]  ;;  %v142_v13 = vld [vmem:[#allocation6 + $0x18] sm:$0xff]  ;;  %vm790_vm0 = vmmov 0   ;;  %v791_v21 = vmov 0.0   ;;  %vm159_vm5 = vcmask 1041409  }
  0x4d   :  { %v881_v2 = vshrl.u32 %v73_v0, 7  ;;  %v587_v14 = vpack.c.bf16 %v140_v9, %v139_v8  ;;  %v590_v17 = vpack.c.bf16 %v142_v13, %v141_v12  ;;  %v143_v18 = vld [vmem:[#allocation6 + $0x20] sm:$0xff]  ;;  %v144_v19 = vld [vmem:[#allocation6 + $0x28] sm:$0xff]  ;;  %543 = vmatprep.mubr.msk.f32.mxu0 %vm790_vm0, %v791_v21  ;;  %v145_v22 = vld [vmem:[#allocation6 + $0x30] sm:$0xff]  ;;  %578 = vmatprep.mubr.msk.f32.mxu1 %vm790_vm0, %v791_v21  ;;  %v907_v58 = vand.u32 127, %v73_v0  ;;  %s792_s3 = smov [#allocation11]  }
  0x4e   :  { %v593_v20 = vpack.c.bf16 %v144_v19, %v143_v18  ;;  %v146_v23 = vld [vmem:[#allocation6 + $0x38] sm:$0xff]  ;;  %v237_v24 = vld [vmem:[#allocation8] sm:$0xff]  ;;  %v238_v25 = vld [vmem:[#allocation8 + $0x8] sm:$0xff]  ;;  %vm161_vm6 = vcmask 1042434   ;;  %vm163_vm7 = vcmask 1043459   ;;  %vm405_vm8 = vcmask 9216  }
  0x4f   :  { %v91_v3 = vsub.s32 2, %v881_v2  ;;  %v77_v4 = vsub.s32 0, %v881_v2  ;;  %v98_v5 = vsub.s32 3, %v881_v2  ;;  %v84_v6 = vsub.s32 1, %v881_v2  ;;  %588 = vmatpush3.bf16.msra.mxu0 %v587_v14  ;;  %v239_v26 = vld [vmem:[#allocation8 + $0x10] sm:$0xff]  ;;  %v240_v29 = vld [vmem:[#allocation8 + $0x18] sm:$0xff] }
  0x50   :  { %589 = vmatprep.subr.bf16.mxu0 %v789_v1  ;;  %v596_v27 = vpack.c.bf16 %v146_v23, %v145_v22  ;;  %v611_v28 = vpack.c.bf16 %v238_v25, %v237_v24  ;;  %v147_v30 = vld [vmem:[#allocation6 + $0x40] sm:$0xff]  ;;  %v148_v31 = vld [vmem:[#allocation6 + $0x48] sm:$0xff]  ;;  %v614_v32 = vpack.c.bf16 %v240_v29, %v239_v26  ;;  %v149_v36 = vld [vmem:[#allocation6 + $0x50] sm:$0xff]  ;;  %vm420_vm9 = vcmp.eq.s32.totalorder %v881_v2, %v907_v58  ;;  %s446_s10 = sshll.u32 %s792_s3, 4  ;;  %s447_s10 = int_to_ptr.vmem [resolvable:$true] %s446_s10 }
  0x51   :  { %v92_v10 = vrot.slane %v72_v7, %v91_v3  ;;  %v78_v11 = vrot.slane %v72_v7, %v77_v4  ;;  %v99_v15 = vrot.slane %v72_v7, %v98_v5  ;;  %v85_v16 = vrot.slane %v72_v7, %v84_v6  ;;  %v241_v33 = vld [vmem:[#allocation8 + $0x20] sm:$0xff]  ;;  %v242_v34 = vld [vmem:[#allocation8 + $0x28] sm:$0xff]  ;;  %v150_v37 = vld [vmem:[#allocation6 + $0x58] sm:$0xff]  ;;  %s741_s17 = scalar_lea.vmem %s447_s10, 64  ;;  %p746_p5 = scmp.lt.s32.totalorder %s447_s10, %s447_s10 }
  0x52   :  { %612 = vmatpush3.bf16.msra.mxu1 %v611_v28  ;;  %v599_v35 = vpack.c.bf16 %v148_v31, %v147_v30  ;;  %v617_v38 = vpack.c.bf16 %v242_v34, %v241_v33  ;;  %v243_v39 = vld [vmem:[#allocation8 + $0x30] sm:$0xff]  ;;  %v244_v40 = vld [vmem:[#allocation8 + $0x38] sm:$0xff]  ;;  %v602_v41 = vpack.c.bf16 %v150_v37, %v149_v36  ;;  %v151_v42 = vld [vmem:[#allocation6 + $0x60] sm:$0xff]  ;;  %vm426_vm10 = vcmask 1024   ;;  %p742_p4 = scmp.ne.s32.totalorder %s447_s10, %s741_s17  ;;  %p747_p6 = scmp.lt.s32.totalorder %s741_s17, %s741_s17 }
  0x53   :  { %94 = vbcast.lane.b32.xlu1 %v92_v10, 256  ;;  %80 = vbcast.lane.b32.xlu0 %v78_v11, 256  ;;  %v152_v43 = vld [vmem:[#allocation6 + $0x68] sm:$0xff]  ;;  %v620_v44 = vpack.c.bf16 %v244_v40, %v243_v39  ;;  %v245_v45 = vld [vmem:[#allocation8 + $0x40] sm:$0xff]  ;;  %v153_v48 = vld [vmem:[#allocation6 + $0x70] sm:$0xff] }
  0x54   :  { %591 = vmatpush3.bf16.msra.mxu0 %v590_v17  ;;  %613 = vmatprep.subr.bf16.mxu1 %v789_v1  ;;  %v246_v46 = vld [vmem:[#allocation8 + $0x48] sm:$0xff]  ;;  %v605_v47 = vpack.c.bf16 %v152_v43, %v151_v42  ;;  %v154_v49 = vld [vmem:[#allocation6 + $0x78] sm:$0xff]  ;;  %v247_v51 = vld [vmem:[#allocation8 + $0x50] sm:$0xff]  ;;  %p748_p7 = por %p747_p6, %p746_p5 }
  0x55   :  { %592 = vmatprep.subr.bf16.mxu0 %v789_v1  ;;  %v623_v50 = vpack.c.bf16 %v246_v46, %v245_v45  ;;  %v248_v52 = vld [vmem:[#allocation8 + $0x58] sm:$0xff]  ;;  %v608_v53 = vpack.c.bf16 %v154_v49, %v153_v48  ;;  %v249_v55 = vld [vmem:[#allocation8 + $0x60] sm:$0xff]  ;;  %v250_v56 = vld [vmem:[#allocation8 + $0x68] sm:$0xff] }
  0x56   :  { %615 = vmatpush3.bf16.msra.mxu1 %v614_v32  ;;  %v626_v54 = vpack.c.bf16 %v248_v52, %v247_v51  ;;  %v629_v57 = vpack.c.bf16 %v250_v56, %v249_v55  ;;  %v251_v32 = vld [vmem:[#allocation8 + $0x70] sm:$0xff]  ;;  %v252_v33 = vld [vmem:[#allocation8 + $0x78] sm:$0xff]  ;;  %p749_p8 = pnand %p748_p7, %p742_p4 }
  0x57   :  { %101 = vbcast.lane.b32.xlu1 %v99_v15, 256  ;;  %87 = vbcast.lane.b32.xlu0 %v85_v16, 256  ;;  %v632_v34 = vpack.c.bf16 %v252_v33, %v251_v32 }
  0x58   :  { %594 = vmatpush3.bf16.msra.mxu0 %v593_v20  ;;  %616 = vmatprep.subr.bf16.mxu1 %v789_v1 }
  0x59   :  { %595 = vmatprep.subr.bf16.mxu0 %v789_v1 }
  0x5a   :  { %618 = vmatpush3.bf16.msra.mxu1 %v617_v38  ;;  %v474_v38 = vld [vmem:[#allocation9] ss:$0 sm:$0xff] }
  0x5b   :  { %619 = vmatprep.subr.bf16.mxu1 %v789_v1 }
  0x5c   :  { %597 = vmatpush3.bf16.msra.mxu0 %v596_v27 }
  0x5d   :  { %598 = vmatprep.subr.bf16.mxu0 %v789_v1 }
  0x5e   :  { %621 = vmatpush3.bf16.msra.mxu1 %v620_v44 }
  0x5f   :  { %622 = vmatprep.subr.bf16.mxu1 %v789_v1 }
  0x60   :  { %600 = vmatpush3.bf16.msra.mxu0 %v599_v35 }
  0x61   :  { %601 = vmatprep.subr.bf16.mxu0 %v789_v1 }
  0x62   :  { %624 = vmatpush3.bf16.msra.mxu1 %v623_v50 }
  0x63   :  { %625 = vmatprep.subr.bf16.mxu1 %v789_v1 }
  0x64   :  { %603 = vmatpush3.bf16.msra.mxu0 %v602_v41 }
  0x65   :  { %604 = vmatprep.subr.bf16.mxu0 %v789_v1 }
  0x66   :  { %627 = vmatpush3.bf16.msra.mxu1 %v626_v54 }
  0x67   :  { %628 = vmatprep.subr.bf16.mxu1 %v789_v1 }
  0x68   :  { %606 = vmatpush3.bf16.msra.mxu0 %v605_v47 }
  0x69   :  { %607 = vmatprep.subr.bf16.mxu0 %v789_v1 }
  0x6a   :  { %630 = vmatpush3.bf16.msra.mxu1 %v629_v57 }
  0x6b   :  { %631 = vmatprep.subr.bf16.mxu1 %v789_v1 }
  0x6c   :  { %609 = vmatpush3.bf16.msra.mxu0 %v608_v53 }
  0x6d   :  { %581 = vmatprep.subr.mxu0 %v791_v21 }
  0x6e   :  { %633 = vmatpush3.bf16.msra.mxu1 %v632_v34 }
  0xc5   :  { %v95_v59 = vpop.permute.xlu1 %94  ;;  %v81_v60 = vpop.permute.xlu0 %80 }
  0xc6   :  { %vm105_vm1 = vcmp.eq.s32.totalorder %v95_v59, %v907_v58  ;;  %vm103_vm2 = vcmp.eq.s32.totalorder %v81_v60, %v907_v58 }
  0xc7   :  { %v472_v61 = vsel %vm105_vm1, 1.0, %v791_v21  ;;  %v470_v62 = vsel %vm103_vm2, 1.0, %v791_v21 }
  0xc8   :  { %v127_v63 = vrot.slane %v472_v61, 4  ;;  %v115_v3 = vrot.slane %v470_v62, 4 }
  0xc9   :  { %v102_v4 = vpop.permute.xlu1 %101  ;;  %v88_v5 = vpop.permute.xlu0 %87 }
  0xca   :  { %v128_v6 = vadd.f32 %v472_v61, %v127_v63  ;;  %v116_v7 = vadd.f32 %v470_v62, %v115_v3  ;;  %vm106_vm3 = vcmp.eq.s32.totalorder %v102_v4, %v907_v58  ;;  %vm104_vm4 = vcmp.eq.s32.totalorder %v88_v5, %v907_v58 }
  0xcb   :  { %v473_v0 = vsel %vm106_vm3, 1.0, %v791_v21  ;;  %v471_v1 = vsel %vm104_vm4, 1.0, %v791_v21 }
  0xcc   :  { %v129_v8 = vrot.slane %v128_v6, 2  ;;  %v117_v9 = vrot.slane %v116_v7, 2  ;;  %v133_v10 = vrot.slane %v473_v0, 4  ;;  %v121_v11 = vrot.slane %v471_v1, 4 }
  0xce   :  { %v118_v12 = vadd.f32 %v117_v9, %v116_v7  ;;  %v134_v13 = vadd.f32 %v473_v0, %v133_v10  ;;  %v122_v14 = vadd.f32 %v471_v1, %v121_v11  ;;  %v130_v15 = vadd.f32 %v129_v8, %v128_v6 }
  0xd0   :  { %v135_v16 = vrot.slane %v134_v13, 2  ;;  %v123_v17 = vrot.slane %v122_v14, 2  ;;  %v119_v18 = vrot.slane %v118_v12, 1  ;;  %v131_v22 = vrot.slane %v130_v15, 1 }
  0xd2   :  { %v136_v19 = vadd.f32 %v135_v16, %v134_v13  ;;  %v124_v20 = vadd.f32 %v123_v17, %v122_v14  ;;  %v120_v25 = vadd.f32 %v119_v18, %v118_v12  ;;  %v132_v27 = vadd.f32 %v131_v22, %v130_v15 }
  0xd4   :  { %v137_v23 = vrot.slane %v136_v19, 1  ;;  %v125_v24 = vrot.slane %v124_v20, 1 }
  0xd6   :  { %v126_v26 = vadd.f32 %v125_v24, %v124_v20  ;;  %v138_v28 = vadd.f32 %v137_v23, %v136_v19 }
  0xd8   :  { %v160_v29 = vsel %vm159_vm5, %v126_v26, %v120_v25 }
  0xd9   :  { %v162_v30 = vsel %vm161_vm6, %v132_v27, %v160_v29 }
  0xda   :  { %v164_v31 = vsel %vm163_vm7, %v138_v28, %v162_v30 }
  0xdb   :  { %544 = vmatmul.mubr.f32.vlgmr.msra.gmra.mrb[0].mxu0 %v164_v31 }
  0xdc   :  { %583 = vmatprep.mubr.msk.f32.mxu0 %vm790_vm0, %v791_v21 }
 0x1ae   :  { %v232_v35 = vpop.f32.mrb[0].mxu0 }
 0x1af   :  { %v236_v36 = vmul.f32 0.125, %v232_v35  ;;  %v545_v37 = vpop.f32.mrb[1].mxu0 }
 0x1b1   :  { %579 = vmatmul.mubr.f32.vlgmr.msra.gmra.mrb[0].mxu1 %v236_v36 }
 0x284   :  { %v326_v39 = vpop.f32.mrb[0].mxu1 }
 0x285   :  { %v327_v40 = vadd.f32 %v474_v38, %v326_v39  ;;  %v580_v41 = vpop.f32.mrb[1].mxu1 }
 0x287   :  { %647 = vtanh.f32 %v327_v40 }
 0x291   :  { %v648_v42 = vpop.eup %647 }
 0x292   :  { %331 = vst [vmem:[#allocation11] sm:$0xf] %v648_v42  ;;  %582 = vmatpush3.xpose.msra.mxu0 %v648_v42  ;;  %v333_v43 = vrot.slane %v648_v42, 2 }
 0x295   :  { %584 = vmatmul.mubr.f32.vlgmr.msra.gmra.mrb[2].mxu0 %v333_v43 }
 0x368   :  { %v401_v21 = vpop.f32.mrb[2].mxu0 }
 0x369   :  { %v585_v44 = vpop.f32.mrb[3].mxu0  ;;  %v406_v45 = vsel %vm405_vm8, %v401_v21, -inf  ;;  %v421_v46 = vsel %vm420_vm9, %v401_v21, 0.0 }
 0x36a   :  { %407 = vmax.xlane.f32.xlu0 %v406_v45  ;;  %v422_v47 = vsel %vm405_vm8, %v421_v46, 0.0 }
 0x36e   :  { %423 = vadd.xlane.f32.xlu0 %v422_v47 }
 0x3f7   :  { %v408_v48 = vpop.xlane.xlu0 %407 }
 0x3f8   :  { %v409_v49 = vsub.f32 %v401_v21, %v408_v48 }
 0x3fa   :  { %v410_v50 = vmul.f32 1.442695, %v409_v49 }
 0x3fb   :  { %v424_v2 = vpop.xlane.xlu0 %423 }
 0x3fc   :  { %649 = vpow2.f32 %v410_v50 }
 0x406   :  { %v650_v51 = vpop.eup %649 }
 0x407   :  { %v412_v52 = vsel %vm405_vm8, %v650_v51, 0.0 }
 0x408   :  { %413 = vadd.xlane.f32.xlu1 %v412_v52 }
 0x495   :  { %v414_v53 = vpop.xlane.xlu1 %413 }
 0x496   :  { %651 = vlog2.f32 %v414_v53 }
 0x4a0   :  { %v652_v54 = vpop.eup %651 }
 0x4a1   :  { %v416_v55 = vmul.f32 0.6931472, %v652_v54 }
 0x4a3   :  { %v417_v56 = vadd.f32 %v416_v55, %v408_v48 }
 0x4a5   :  { %v425_v57 = vsub.f32 %v417_v56, %v424_v2 }
 0x4a7   :  { %v427_v58 = vsel %vm426_vm10, %v425_v57, 0.0 }
 0x4a8   :  { %428 = vadd.xlane.f32.xlu0 %v427_v58 }
 0x4a9   :  { %752 = shalt.err (!%p749_p8)
}
 0x4aa   :  { %s753_s19 = scalar_lea.hbm %s949_s4, 64 }
 0x4ab   :  { %p754_p9 = scmp.ne.s32.totalorder %s949_s4, %s753_s19  ;;  %p757_p10 = scmp.lt.u32.totalorder %s753_s19, %s949_s4 }
 0x4ad   :  { %p759_p11 = pnand %p757_p10, %p754_p9 }
 0x4af   :  { %762 = shalt.err (!%p759_p11)
}
 0x4b0   :  { %449 = dma.vmem_to_hbm [thread:$0]  %s447_s10, 64, %s949_s4, [#allocation4]  }
 0x4b1   :  { %s763_s6 = scalar_lea.hbm %s950_s5, 16 }
 0x4b2   :  { %p764_p12 = scmp.ne.s32.totalorder %s950_s5, %s763_s6  ;;  %p767_p13 = scmp.lt.u32.totalorder %s763_s6, %s950_s5 }
 0x4b4   :  { %p769_p0 = pnand %p767_p13, %p764_p12 }
 0x535   :  { %v429_v59 = vpop.xlane.xlu0 %428 }
 0x536   :  { %v430_v60 = vrot.slane %v429_v59, 4 }
 0x538   :  { %v431_v61 = vadd.f32 %v430_v60, %v429_v59 }
 0x53a   :  { %v432_v62 = vrot.slane %v431_v61, 2 }
 0x53c   :  { %v433_v63 = vadd.f32 %v432_v62, %v431_v61 }
 0x53e   :  { %v434_v3 = vrot.slane %v433_v63, 1 }
 0x540   :  { %v435_v4 = vadd.f32 %v434_v3, %v433_v63 }
 0x542   :  { %634 = vpush %v435_v4 }
 0x573   :  { %s635_s26 = spop %634 }
 0x574   :  { %s437_s27 = smul.f32 0.5, %s635_s26 }
 0x576   :  { %439 = sst [smem:[#allocation12]] %s437_s27 }
 0x577   :  { %772 = shalt.err (!%p769_p0)
}
 0x578   :  { %s793_s11 = smov [#allocation12]  }
 0x579   :  { %457 = dma.smem_to_hbm %s793_s11, 16, %s950_s5, [#allocation5]  }
 0x57a   :  { %779 = dma.done.wait [#allocation4], 64  }
 0x57b   :  { %780 = vsyncadd [#allocation4], 4294967232 }
 0x57c   :  { %781 = dma.done.wait [#allocation5], 16  }
 0x57d   :  { %782 = vsyncadd [#allocation5], 4294967280 }
 0x57e   :  { %464 = sfence }
 0x57f   :  { %465 = vsyncpa [#allocation3], 1 }
 0x580   :  { %466 = vsyncpa [#allocation7], 1 }
 0x581   :  { %467 = vsyncpa [#allocation10], 1 }
 0x582   :  { %468 = vsyncpa [#allocation4], 1 }
 0x583   :  { %469 = vsyncpa [#allocation5], 1 }

</bundles_post_ra>
